<compile_context>
chip_gen: v6e
topology: v6e:2x2x1
jax: 0.10.0
libtpu: 0.0.40
codegen_flags: <defaults>
</compile_context>

<pallas_src>
import functools

import jax
import jax.numpy as jnp
import numpy as np
from jax.experimental import pallas as pl
from jax.experimental.pallas import tpu as pltpu


_NUM_PARAMS = 4          # sti, tr, c80, c50
_MAX_TILE_T = 8192       # cap on the lane tile; amortizes ~0.35 us/step overhead


# ----------------------------- Pallas kernel ------------------------------ #
def _metric_kernel(len_ref, gts_ref, sti_ref, tr_ref, c80_ref, c50_ref,
                   out_ref, acc0, acc1, acc2, acc3, *, tile_t):
    """Grid = (t_tile,).  hats: [B, tile_t]; len: [B,1] i32; gts: [B,4] f32."""
    t_idx = pl.program_id(0)
    hat_refs = (sti_ref, tr_ref, c80_ref, c50_ref)
    accs = (acc0, acc1, acc2, acc3)
    b = len_ref.shape[0]

    # ---- init lane-dense accumulators on the first T tile ---- #
    @pl.when(t_idx == 0)
    def _init():
        for acc in accs:
            acc[...] = jnp.zeros_like(acc)

    # ---- masked partial sums for this tile (VPU adds only, no XLU) ---- #
    lens = len_ref[...]                       # [B,1] int32, pre-clamped to [1,T]
    base = t_idx * tile_t
    n_full = tile_t // 128
    rem = tile_t % 128                        # nonzero only when tile_t == T < multiple

    if n_full > 0:
        lane = jax.lax.broadcasted_iota(jnp.int32, (b, 128), 1)
        partials = [jnp.zeros((b, 128), jnp.float32) for _ in range(_NUM_PARAMS)]
        for c in range(n_full):
            lo = c * 128
            # where() (not mask*x): garbage in the padded last block (cols >= T)
            # can never poison the sums (NaN/Inf dropped, not multiplied).
            valid = (lane + (base + lo)) < lens                   # [B,128] bool
            for p, hat in enumerate(hat_refs):
                x = hat[:, lo:lo + 128].astype(jnp.float32)
                partials[p] = partials[p] + jnp.where(valid, x, 0.0)
        for p in range(_NUM_PARAMS):
            accs[p][...] += partials[p]

    if rem > 0:
        lo = n_full * 128
        lane_r = jax.lax.broadcasted_iota(jnp.int32, (b, rem), 1)
        valid_r = (lane_r + (base + lo)) < lens                   # [B,rem] bool
        for p, hat in enumerate(hat_refs):
            x = hat[:, lo:tile_t].astype(jnp.float32)
            accs[p][:, :rem] += jnp.where(valid_r, x, 0.0)

    # ---- finalize: L1 loss + |Pearson corr| over the batch axis ---- #
    @pl.when(t_idx == pl.num_programs(0) - 1)
    def _finalize():
        counts = lens.astype(jnp.float32)                         # [B,1], >= 1
        # One XLU lane-reduce per parameter, exact division (no approx recip).
        pooled = jnp.concatenate(
            [jnp.sum(acc[...], axis=-1, keepdims=True) / counts for acc in accs],
            axis=-1)                                              # [B,4]
        gts = gts_ref[...]                                        # [B,4]
        inv_b = 1.0 / b
        loss = jnp.sum(jnp.abs(pooled - gts), axis=0, keepdims=True) * inv_b  # [1,4]
        mx = jnp.sum(pooled, axis=0, keepdims=True) * inv_b
        my = jnp.sum(gts, axis=0, keepdims=True) * inv_b
        dx = pooled - mx
        dy = gts - my
        num = jnp.sum(dx * dy, axis=0, keepdims=True)
        sxx = jnp.sum(dx * dx, axis=0, keepdims=True)
        syy = jnp.sum(dy * dy, axis=0, keepdims=True)
        # Degenerate batches (constant gts or constant pooled) give sxx*syy == 0
        # -> NaN corr, matching the PyTorch/torchmetrics reference behavior.
        corr = jnp.abs(num) / jnp.sqrt(sxx * syy)                 # [1,4]
        out_ref[0:1, :] = loss
        out_ref[1:2, :] = corr


# --------------------------- tile-size selection --------------------------- #
def _pick_tile(batch, seq, itemsize, max_tile_t=None):
    try:
        vmem_cap = int(pltpu.get_tpu_info().vmem_capacity_bytes)
    except Exception:
        vmem_cap = 64 * 1024 * 1024            # v7x per-TC worst case
    vmem_limit = min(vmem_cap // 2, 64 * 1024 * 1024)
    # 4 hat operands x double-buffered (B, tile_t) blocks; keep them within
    # half the scoped VMEM (rest: gts/lengths/output/scratch + headroom).
    budget = vmem_limit // 2
    cap = max(budget // (_NUM_PARAMS * 2 * batch * itemsize), 128)
    cap = min(cap, _MAX_TILE_T)
    if max_tile_t is not None:
        cap = min(cap, max_tile_t)
    if seq <= cap:
        return seq, vmem_limit                 # single full-T tile
    return max((cap // 128) * 128, 128), vmem_limit


def _run_metric_kernel(hats, lengths, gts, max_tile_t=None):
    """hats: 4 x [B,T] (native dtype); lengths: [B,1] i32; gts: [B,4] f32."""
    B, T = hats[0].shape
    itemsize = max(int(h.dtype.itemsize) for h in hats)
    tile_t, vmem_limit = _pick_tile(B, T, itemsize, max_tile_t)
    grid_t = pl.cdiv(T, tile_t)

    hat_spec = pl.BlockSpec((B, tile_t), lambda t: (0, t))
    out = pl.pallas_call(
        functools.partial(_metric_kernel, tile_t=tile_t),
        out_shape=jax.ShapeDtypeStruct((2, _NUM_PARAMS), jnp.float32),
        grid_spec=pltpu.PrefetchScalarGridSpec(
            num_scalar_prefetch=0,
            grid=(grid_t,),
            in_specs=[
                pl.BlockSpec((B, 1), lambda t: (0, 0)),             # lengths
                pl.BlockSpec((B, _NUM_PARAMS), lambda t: (0, 0)),   # gts
                hat_spec, hat_spec, hat_spec, hat_spec,             # 4 hats
            ],
            out_specs=pl.BlockSpec((2, _NUM_PARAMS), lambda t: (0, 0)),
            scratch_shapes=[pltpu.VMEM((B, 128), jnp.float32)
                            for _ in range(_NUM_PARAMS)],
        ),
        compiler_params=pltpu.CompilerParams(
            dimension_semantics=("arbitrary",),
            vmem_limit_bytes=int(vmem_limit),
        ),
    )(lengths, gts, *hats)
    return out  # [2,4]: row 0 = L1 loss, row 1 = |corr|; cols = sti,tr,c80,c50


# ------------------------------- glue (JAX) -------------------------------- #
_ROOM_PARAM_LAYERS = [(384, 3, 1, 1), (384, 3, 1, 1), (384, 5, 3, 0), (384, 3, 1, 1)]


def _get_param_pred_output_lengths(input_lengths):
    L = input_lengths.astype(jnp.float32)
    for _, k, s, p in _ROOM_PARAM_LAYERS:
        L = jnp.floor((L + 2 * p - (k - 1) - 1) / s + 1)
    return L.astype(jnp.int32)


def rp_joint_estimation_evaluation(param_hat, param_groundtruth, *, _max_tile_t=None):
    sti_hat = param_hat["sti_hat"]
    tr_hat = param_hat["tr_hat"]
    c80_hat = param_hat["c80_hat"]
    c50_hat = param_hat["c50_hat"]
    padding_mask = param_hat.get("padding_mask", None)
    sti = param_groundtruth["sti"]
    tr = param_groundtruth["tr"]
    c80 = param_groundtruth["c80"]
    c50 = param_groundtruth["c50"]

    assert sti_hat.shape == tr_hat.shape == c80_hat.shape == c50_hat.shape
    assert sti_hat.ndim == 2  # TODO(synk): 1-D prediction branch (plain mean) not implemented.
    B, T = sti_hat.shape

    # Static (Python-level) None check only; no data-dependent host sync.
    # All-valid rows give output_length == T so the masked path subsumes the
    # "no padding" plain-mean branch of the reference.
    if padding_mask is not None:
        input_lengths = jnp.sum(1 - padding_mask.astype(jnp.int32), axis=-1)
        output_lengths = _get_param_pred_output_lengths(input_lengths)      # [B]
    else:
        output_lengths = jnp.full((B,), T, dtype=jnp.int32)
    # Clamp to [1, T]: guards degenerate rows (output_length <= 0 would give
    # a 0/0 -> NaN that poisons loss/corr for the whole batch).
    lengths = jnp.clip(output_lengths, 1, T).reshape(B, 1).astype(jnp.int32)

    gts = jnp.stack([sti, tr, c80, c50], axis=-1).astype(jnp.float32)       # [B,4] (tiny)

    out = _run_metric_kernel((sti_hat, tr_hat, c80_hat, c50_hat), lengths, gts,
                             max_tile_t=_max_tile_t)                        # [2,4]
    names = ["sti", "tr", "c80", "c50"]
    result = {}
    for i, n in enumerate(names):
        result[f"loss_{n}"] = out[0, i]
        result[f"corr_{n}"] = out[1, i]
    return result


# --------------------------- pure-numpy reference --------------------------- #
def _reference(param_hat, param_gt):
    hats = {k: np.asarray(param_hat[k], np.float64)
            for k in ["sti_hat", "tr_hat", "c80_hat", "c50_hat"]}
    pm = np.asarray(param_hat["padding_mask"])
    B, T = hats["sti_hat"].shape
    lengths = (1 - pm.astype(np.int64)).sum(-1).astype(np.float64)
    for _, k, s, p in _ROOM_PARAM_LAYERS:
        lengths = np.floor((lengths + 2 * p - (k - 1) - 1) / s + 1)
    lengths = lengths.astype(np.int64)
    rmask = (np.arange(T)[None, :] < lengths[:, None]).astype(np.float64)

    out = {}
    for name in ["sti", "tr", "c80", "c50"]:
        h = hats[f"{name}_hat"]
        g = np.asarray(param_gt[name], np.float64)
        pooled = (h * rmask).sum(1) / rmask.sum(1)
        out[f"loss_{name}"] = np.mean(np.abs(pooled - g))
        dx = pooled - pooled.mean()
        dy = g - g.mean()
        out[f"corr_{name}"] = abs((dx * dy).sum()
                                  / np.sqrt((dx * dx).sum() * (dy * dy).sum()))
    return out


# ----------------------------------- main ----------------------------------- #
def _make_case(key, B, T_in, lengths_in):
    # conv stack maps input length L -> floor((L - 5) / 3) + 1
    T = int(np.floor((T_in - 5) / 3) + 1)
    keys = jax.random.split(key, 8)
    param_hat = {
        "sti_hat": jax.random.uniform(keys[0], (B, T), jnp.float32),
        "tr_hat": jax.random.uniform(keys[1], (B, T), jnp.float32) * 2.0,
        "c80_hat": jax.random.normal(keys[2], (B, T), jnp.float32) * 5.0,
        "c50_hat": jax.random.normal(keys[3], (B, T), jnp.float32) * 5.0,
    }
    pm = np.zeros((B, T_in), np.bool_)     # input-frame mask: True = padded
    for b in range(B):
        pm[b, int(lengths_in[b]):] = True
    param_hat["padding_mask"] = jnp.asarray(pm)
    param_gt = {
        "sti": jax.random.uniform(keys[4], (B,), jnp.float32),
        "tr": jax.random.uniform(keys[5], (B,), jnp.float32) * 2.0,
        "c80": jax.random.normal(keys[6], (B,), jnp.float32) * 5.0,
        "c50": jax.random.normal(keys[7], (B,), jnp.float32) * 5.0,
    }
    return param_hat, param_gt


if __name__ == "__main__":
    root = jax.random.PRNGKey(0)
    k1, k2, k3 = jax.random.split(root, 3)

    cases = [
        # (key, B, T_in, per-row input lengths, tile override)
        (k1, 4, 26,  [26, 20, 17, 23],            None),  # T=8:   single tiny tile (rem path)
        (k2, 4, 902, [902, 700, 450, 333],        256),   # T=300: 2 tiles of 256 (chunked + padded last block)
        (k3, 5, 602, [602, 500, 401, 250, 100],   None),  # T=200: full tile, 128-chunk + 72-rem path
    ]

    for key, B, T_in, lens_in, max_tile in cases:
        param_hat, param_gt = _make_case(key, B, T_in, lens_in)
        result = rp_joint_estimation_evaluation(param_hat, param_gt,
                                                _max_tile_t=max_tile)
        result = jax.tree_util.tree_map(jax.block_until_ready, result)
        ref = _reference(param_hat, param_gt)
        for k in ref:
            np.testing.assert_allclose(np.asarray(result[k]), ref[k],
                                       rtol=1e-4, atol=1e-4)
    print("KERNEL_OK")
</pallas_src>

<mosaic_0001>
module attributes {stable_mosaic.version = 11 : i64} {
  func.func @_metric_kernel(%arg0: i32, %arg1: memref<4x1xi32, #tpu.memory_space<vmem>>, %arg2: memref<4x4xf32, #tpu.memory_space<vmem>>, %arg3: memref<4x8xf32, #tpu.memory_space<vmem>>, %arg4: memref<4x8xf32, #tpu.memory_space<vmem>>, %arg5: memref<4x8xf32, #tpu.memory_space<vmem>>, %arg6: memref<4x8xf32, #tpu.memory_space<vmem>>, %arg7: memref<2x4xf32, #tpu.memory_space<vmem>>, %arg8: memref<4x128xf32, #tpu.memory_space<vmem>>, %arg9: memref<4x128xf32, #tpu.memory_space<vmem>>, %arg10: memref<4x128xf32, #tpu.memory_space<vmem>>, %arg11: memref<4x128xf32, #tpu.memory_space<vmem>>) attributes {dimension_semantics = [#tpu.dimension_semantics<arbitrary>], iteration_bounds = array<i64: 1>, scalar_prefetch = 0 : i64, scratch_operands = 4 : i64, tpu.core_type = #tpu.core_type<tc>, window_params = [{pipeline_mode = #tpu.pipeline_mode<synchronous>, transform_indices = @transform_0, window_bounds = array<i64: 4, 1>}, {pipeline_mode = #tpu.pipeline_mode<synchronous>, transform_indices = @transform_1, window_bounds = array<i64: 4, 4>}, {transform_indices = @transform_2, window_bounds = array<i64: 4, 8>}, {transform_indices = @transform_3, window_bounds = array<i64: 4, 8>}, {transform_indices = @transform_4, window_bounds = array<i64: 4, 8>}, {transform_indices = @transform_5, window_bounds = array<i64: 4, 8>}, {pipeline_mode = #tpu.pipeline_mode<synchronous>, transform_indices = @transform_6, window_bounds = array<i64: 2, 4>}]} {
    %c0_i32 = arith.constant 0 : i32
    %0 = arith.cmpi eq, %arg0, %c0_i32 : i32
    %1 = arith.extui %0 : i1 to i32
    %c0_i32_0 = arith.constant 0 : i32
    %2 = arith.cmpi ne, %1, %c0_i32_0 : i32
    scf.if %2 {
      %cst_32 = arith.constant 0.000000e+00 : f32
      %38 = vector.broadcast %cst_32 : f32 to vector<4x128xf32>
      %c0_33 = arith.constant 0 : index
      %c0_34 = arith.constant 0 : index
      %39 = vector.load %arg8[%c0_33, %c0_34] : memref<4x128xf32, #tpu.memory_space<vmem>>, vector<4x128xf32>
      tpu.vector_store %arg8[%c0_33, %c0_34], %38 {strides = array<i32>} : memref<4x128xf32, #tpu.memory_space<vmem>>, vector<4x128xf32>,
      %cst_35 = arith.constant 0.000000e+00 : f32
      %40 = vector.broadcast %cst_35 : f32 to vector<4x128xf32>
      %c0_36 = arith.constant 0 : index
      %c0_37 = arith.constant 0 : index
      %41 = vector.load %arg9[%c0_36, %c0_37] : memref<4x128xf32, #tpu.memory_space<vmem>>, vector<4x128xf32>
      tpu.vector_store %arg9[%c0_36, %c0_37], %40 {strides = array<i32>} : memref<4x128xf32, #tpu.memory_space<vmem>>, vector<4x128xf32>,
      %cst_38 = arith.constant 0.000000e+00 : f32
      %42 = vector.broadcast %cst_38 : f32 to vector<4x128xf32>
      %c0_39 = arith.constant 0 : index
      %c0_40 = arith.constant 0 : index
      %43 = vector.load %arg10[%c0_39, %c0_40] : memref<4x128xf32, #tpu.memory_space<vmem>>, vector<4x128xf32>
      tpu.vector_store %arg10[%c0_39, %c0_40], %42 {strides = array<i32>} : memref<4x128xf32, #tpu.memory_space<vmem>>, vector<4x128xf32>,
      %cst_41 = arith.constant 0.000000e+00 : f32
      %44 = vector.broadcast %cst_41 : f32 to vector<4x128xf32>
      %c0_42 = arith.constant 0 : index
      %c0_43 = arith.constant 0 : index
      %45 = vector.load %arg11[%c0_42, %c0_43] : memref<4x128xf32, #tpu.memory_space<vmem>>, vector<4x128xf32>
      tpu.vector_store %arg11[%c0_42, %c0_43], %44 {strides = array<i32>} : memref<4x128xf32, #tpu.memory_space<vmem>>, vector<4x128xf32>,
    } else {
    }
    %c0 = arith.constant 0 : index
    %c0_1 = arith.constant 0 : index
    %3 = vector.load %arg1[%c0, %c0_1] : memref<4x1xi32, #tpu.memory_space<vmem>>, vector<4x1xi32>
    %c8_i32 = arith.constant 8 : i32
    %4 = arith.muli %arg0, %c8_i32 : i32
    %5 = tpu.iota {dimensions = array<i32: 1>} : vector<4x8xi32>
    %c0_i32_2 = arith.constant 0 : i32
    %6 = arith.addi %4, %c0_i32_2 : i32
    %7 = vector.broadcast %6 : i32 to vector<4x8xi32>
    %8 = arith.addi %5, %7 : vector<4x8xi32>
    %9 = vector.broadcast %3 : vector<4x1xi32> to vector<4x8xi32>
    %10 = arith.cmpi slt, %8, %9 : vector<4x8xi32>
    %c0_3 = arith.constant 0 : index
    %c0_4 = arith.constant 0 : index
    %11 = vector.load %arg3[%c0_3, %c0_4] : memref<4x8xf32, #tpu.memory_space<vmem>>, vector<4x8xf32>
    %c0_5 = arith.constant 0 : index
    %c0_6 = arith.constant 0 : index
    %12 = vector.load %arg8[%c0_5, %c0_6] : memref<4x128xf32, #tpu.memory_space<vmem>>, vector<4x8xf32>
    %cst = arith.constant 0.000000e+00 : f32
    %13 = vector.broadcast %cst : f32 to vector<4x8xf32>
    %14 = arith.select %10, %11, %13 : vector<4x8xi1>, vector<4x8xf32>
    %15 = arith.addf %12, %14 : vector<4x8xf32>
    %c0_7 = arith.constant 0 : index
    %c0_8 = arith.constant 0 : index
    %16 = vector.load %arg8[%c0_7, %c0_8] : memref<4x128xf32, #tpu.memory_space<vmem>>, vector<4x8xf32>
    tpu.vector_store %arg8[%c0_7, %c0_8], %15 {strides = array<i32>} : memref<4x128xf32, #tpu.memory_space<vmem>>, vector<4x8xf32>,
    %c0_9 = arith.constant 0 : index
    %c0_10 = arith.constant 0 : index
    %17 = vector.load %arg4[%c0_9, %c0_10] : memref<4x8xf32, #tpu.memory_space<vmem>>, vector<4x8xf32>
    %c0_11 = arith.constant 0 : index
    %c0_12 = arith.constant 0 : index
    %18 = vector.load %arg9[%c0_11, %c0_12] : memref<4x128xf32, #tpu.memory_space<vmem>>, vector<4x8xf32>
    %cst_13 = arith.constant 0.000000e+00 : f32
    %19 = vector.broadcast %cst_13 : f32 to vector<4x8xf32>
    %20 = arith.select %10, %17, %19 : vector<4x8xi1>, vector<4x8xf32>
    %21 = arith.addf %18, %20 : vector<4x8xf32>
    %c0_14 = arith.constant 0 : index
    %c0_15 = arith.constant 0 : index
    %22 = vector.load %arg9[%c0_14, %c0_15] : memref<4x128xf32, #tpu.memory_space<vmem>>, vector<4x8xf32>
    tpu.vector_store %arg9[%c0_14, %c0_15], %21 {strides = array<i32>} : memref<4x128xf32, #tpu.memory_space<vmem>>, vector<4x8xf32>,
    %c0_16 = arith.constant 0 : index
    %c0_17 = arith.constant 0 : index
    %23 = vector.load %arg5[%c0_16, %c0_17] : memref<4x8xf32, #tpu.memory_space<vmem>>, vector<4x8xf32>
    %c0_18 = arith.constant 0 : index
    %c0_19 = arith.constant 0 : index
    %24 = vector.load %arg10[%c0_18, %c0_19] : memref<4x128xf32, #tpu.memory_space<vmem>>, vector<4x8xf32>
    %cst_20 = arith.constant 0.000000e+00 : f32
    %25 = vector.broadcast %cst_20 : f32 to vector<4x8xf32>
    %26 = arith.select %10, %23, %25 : vector<4x8xi1>, vector<4x8xf32>
    %27 = arith.addf %24, %26 : vector<4x8xf32>
    %c0_21 = arith.constant 0 : index
    %c0_22 = arith.constant 0 : index
    %28 = vector.load %arg10[%c0_21, %c0_22] : memref<4x128xf32, #tpu.memory_space<vmem>>, vector<4x8xf32>
    tpu.vector_store %arg10[%c0_21, %c0_22], %27 {strides = array<i32>} : memref<4x128xf32, #tpu.memory_space<vmem>>, vector<4x8xf32>,
    %c0_23 = arith.constant 0 : index
    %c0_24 = arith.constant 0 : index
    %29 = vector.load %arg6[%c0_23, %c0_24] : memref<4x8xf32, #tpu.memory_space<vmem>>, vector<4x8xf32>
    %c0_25 = arith.constant 0 : index
    %c0_26 = arith.constant 0 : index
    %30 = vector.load %arg11[%c0_25, %c0_26] : memref<4x128xf32, #tpu.memory_space<vmem>>, vector<4x8xf32>
    %cst_27 = arith.constant 0.000000e+00 : f32
    %31 = vector.broadcast %cst_27 : f32 to vector<4x8xf32>
    %32 = arith.select %10, %29, %31 : vector<4x8xi1>, vector<4x8xf32>
    %33 = arith.addf %30, %32 : vector<4x8xf32>
    %c0_28 = arith.constant 0 : index
    %c0_29 = arith.constant 0 : index
    %34 = vector.load %arg11[%c0_28, %c0_29] : memref<4x128xf32, #tpu.memory_space<vmem>>, vector<4x8xf32>
    tpu.vector_store %arg11[%c0_28, %c0_29], %33 {strides = array<i32>} : memref<4x128xf32, #tpu.memory_space<vmem>>, vector<4x8xf32>,
    %c0_i32_30 = arith.constant 0 : i32
    %35 = arith.cmpi eq, %arg0, %c0_i32_30 : i32
    %36 = arith.extui %35 : i1 to i32
    %c0_i32_31 = arith.constant 0 : i32
    %37 = arith.cmpi ne, %36, %c0_i32_31 : i32
    scf.if %37 {
      %38 = arith.sitofp %3 : vector<4x1xi32> to vector<4x1xf32>
      %c0_32 = arith.constant 0 : index
      %c0_33 = arith.constant 0 : index
      %39 = vector.load %arg8[%c0_32, %c0_33] : memref<4x128xf32, #tpu.memory_space<vmem>>, vector<4x128xf32>
      %cst_34 = arith.constant dense<0.000000e+00> : vector<4xf32>
      %40 = vector.multi_reduction <add>, %39, %cst_34 [1] : vector<4x128xf32> to vector<4xf32>
      %41 = vector.shape_cast %40 : vector<4xf32> to vector<4x1xf32>
      %42 = arith.divf %41, %38 : vector<4x1xf32>
      %c0_35 = arith.constant 0 : index
      %c0_36 = arith.constant 0 : index
      %43 = vector.load %arg9[%c0_35, %c0_36] : memref<4x128xf32, #tpu.memory_space<vmem>>, vector<4x128xf32>
      %cst_37 = arith.constant dense<0.000000e+00> : vector<4xf32>
      %44 = vector.multi_reduction <add>, %43, %cst_37 [1] : vector<4x128xf32> to vector<4xf32>
      %45 = vector.shape_cast %44 : vector<4xf32> to vector<4x1xf32>
      %46 = arith.divf %45, %38 : vector<4x1xf32>
      %c0_38 = arith.constant 0 : index
      %c0_39 = arith.constant 0 : index
      %47 = vector.load %arg10[%c0_38, %c0_39] : memref<4x128xf32, #tpu.memory_space<vmem>>, vector<4x128xf32>
      %cst_40 = arith.constant dense<0.000000e+00> : vector<4xf32>
      %48 = vector.multi_reduction <add>, %47, %cst_40 [1] : vector<4x128xf32> to vector<4xf32>
      %49 = vector.shape_cast %48 : vector<4xf32> to vector<4x1xf32>
      %50 = arith.divf %49, %38 : vector<4x1xf32>
      %c0_41 = arith.constant 0 : index
      %c0_42 = arith.constant 0 : index
      %51 = vector.load %arg11[%c0_41, %c0_42] : memref<4x128xf32, #tpu.memory_space<vmem>>, vector<4x128xf32>
      %cst_43 = arith.constant dense<0.000000e+00> : vector<4xf32>
      %52 = vector.multi_reduction <add>, %51, %cst_43 [1] : vector<4x128xf32> to vector<4xf32>
      %53 = vector.shape_cast %52 : vector<4xf32> to vector<4x1xf32>
      %54 = arith.divf %53, %38 : vector<4x1xf32>
      %55 = tpu.concatenate %42, %46, %50, %54 in 1 : vector<4x1xf32>, vector<4x1xf32>, vector<4x1xf32>, vector<4x1xf32> -> vector<4x4xf32>
      %c0_44 = arith.constant 0 : index
      %c0_45 = arith.constant 0 : index
      %56 = vector.load %arg2[%c0_44, %c0_45] : memref<4x4xf32, #tpu.memory_space<vmem>>, vector<4x4xf32>
      %57 = arith.subf %55, %56 : vector<4x4xf32>
      %58 = math.absf %57 : vector<4x4xf32>
      %cst_46 = arith.constant dense<0.000000e+00> : vector<4xf32>
      %59 = vector.multi_reduction <add>, %58, %cst_46 [0] : vector<4x4xf32> to vector<4xf32>
      %60 = vector.shape_cast %59 : vector<4xf32> to vector<1x4xf32>
      %cst_47 = arith.constant 2.500000e-01 : f32
      %61 = vector.broadcast %cst_47 : f32 to vector<1x4xf32>
      %62 = arith.mulf %60, %61 : vector<1x4xf32>
      %cst_48 = arith.constant dense<0.000000e+00> : vector<4xf32>
      %63 = vector.multi_reduction <add>, %55, %cst_48 [0] : vector<4x4xf32> to vector<4xf32>
      %64 = vector.shape_cast %63 : vector<4xf32> to vector<1x4xf32>
      %cst_49 = arith.constant 2.500000e-01 : f32
      %65 = vector.broadcast %cst_49 : f32 to vector<1x4xf32>
      %66 = arith.mulf %64, %65 : vector<1x4xf32>
      %cst_50 = arith.constant dense<0.000000e+00> : vector<4xf32>
      %67 = vector.multi_reduction <add>, %56, %cst_50 [0] : vector<4x4xf32> to vector<4xf32>
      %68 = vector.shape_cast %67 : vector<4xf32> to vector<1x4xf32>
      %cst_51 = arith.constant 2.500000e-01 : f32
      %69 = vector.broadcast %cst_51 : f32 to vector<1x4xf32>
      %70 = arith.mulf %68, %69 : vector<1x4xf32>
      %71 = vector.broadcast %66 : vector<1x4xf32> to vector<4x4xf32>
      %72 = arith.subf %55, %71 : vector<4x4xf32>
      %73 = vector.broadcast %70 : vector<1x4xf32> to vector<4x4xf32>
      %74 = arith.subf %56, %73 : vector<4x4xf32>
      %75 = arith.mulf %72, %74 : vector<4x4xf32>
      %cst_52 = arith.constant dense<0.000000e+00> : vector<4xf32>
      %76 = vector.multi_reduction <add>, %75, %cst_52 [0] : vector<4x4xf32> to vector<4xf32>
      %77 = vector.shape_cast %76 : vector<4xf32> to vector<1x4xf32>
      %78 = arith.mulf %72, %72 : vector<4x4xf32>
      %cst_53 = arith.constant dense<0.000000e+00> : vector<4xf32>
      %79 = vector.multi_reduction <add>, %78, %cst_53 [0] : vector<4x4xf32> to vector<4xf32>
      %80 = vector.shape_cast %79 : vector<4xf32> to vector<1x4xf32>
      %81 = arith.mulf %74, %74 : vector<4x4xf32>
      %cst_54 = arith.constant dense<0.000000e+00> : vector<4xf32>
      %82 = vector.multi_reduction <add>, %81, %cst_54 [0] : vector<4x4xf32> to vector<4xf32>
      %83 = vector.shape_cast %82 : vector<4xf32> to vector<1x4xf32>
      %84 = math.absf %77 : vector<1x4xf32>
      %85 = arith.mulf %80, %83 : vector<1x4xf32>
      %86 = math.sqrt %85 : vector<1x4xf32>
      %87 = arith.divf %84, %86 : vector<1x4xf32>
      %c0_55 = arith.constant 0 : index
      %c0_56 = arith.constant 0 : index
      %88 = vector.load %arg7[%c0_55, %c0_56] : memref<2x4xf32, #tpu.memory_space<vmem>>, vector<1x4xf32>
      tpu.vector_store %arg7[%c0_55, %c0_56], %62 {strides = array<i32>} : memref<2x4xf32, #tpu.memory_space<vmem>>, vector<1x4xf32>,
      %c1 = arith.constant 1 : index
      %c0_57 = arith.constant 0 : index
      %89 = vector.load %arg7[%c1, %c0_57] : memref<2x4xf32, #tpu.memory_space<vmem>>, vector<1x4xf32>
      tpu.vector_store %arg7[%c1, %c0_57], %87 {strides = array<i32>} : memref<2x4xf32, #tpu.memory_space<vmem>>, vector<1x4xf32>,
    } else {
    }
    return
  }
  func.func @transform_0(%arg0: i32) -> (i32, i32) {
    %c0_i32 = arith.constant 0 : i32
    %c0_i32_0 = arith.constant 0 : i32
    %c0_i32_1 = arith.constant 0 : i32
    return %c0_i32, %c0_i32_0 : i32, i32
  }
  func.func @transform_1(%arg0: i32) -> (i32, i32) {
    %c0_i32 = arith.constant 0 : i32
    %c0_i32_0 = arith.constant 0 : i32
    %c0_i32_1 = arith.constant 0 : i32
    return %c0_i32, %c0_i32_0 : i32, i32
  }
  func.func @transform_2(%arg0: i32) -> (i32, i32) {
    %c0_i32 = arith.constant 0 : i32
    %c0_i32_0 = arith.constant 0 : i32
    return %c0_i32, %arg0 : i32, i32
  }
  func.func @transform_3(%arg0: i32) -> (i32, i32) {
    %c0_i32 = arith.constant 0 : i32
    %c0_i32_0 = arith.constant 0 : i32
    return %c0_i32, %arg0 : i32, i32
  }
  func.func @transform_4(%arg0: i32) -> (i32, i32) {
    %c0_i32 = arith.constant 0 : i32
    %c0_i32_0 = arith.constant 0 : i32
    return %c0_i32, %arg0 : i32, i32
  }
  func.func @transform_5(%arg0: i32) -> (i32, i32) {
    %c0_i32 = arith.constant 0 : i32
    %c0_i32_0 = arith.constant 0 : i32
    return %c0_i32, %arg0 : i32, i32
  }
  func.func @transform_6(%arg0: i32) -> (i32, i32) {
    %c0_i32 = arith.constant 0 : i32
    %c0_i32_0 = arith.constant 0 : i32
    %c0_i32_1 = arith.constant 0 : i32
    return %c0_i32, %c0_i32_0 : i32, i32
  }
}

</mosaic_0001>

<bundles_post_ra>
// kernel: tpu_custom_call.1
= control target key start
LH: loop header
LB: loop body
LE: loop exit
PB: predicated region body
PF: predicated region fallthrough
CT: control target
= control target key end

     0   :  { %11 = vsyncpa [#allocation7], 0  ;;  %s368_s0 = inlined_call_operand.vmem [shape: s32[4,1], index: 0, kind: input, shape index: {}]   ;;  %s369_s1 = inlined_call_operand.vmem [shape: f32[4,4], index: 1, kind: input, shape index: {}]   ;;  %s370_s2 = inlined_call_operand.vmem [shape: f32[4,8], index: 2, kind: input, shape index: {}]   ;;  %s371_s3 = inlined_call_operand.hbm [shape: f32[4,8], index: 3, kind: input, shape index: {}]   ;;  %s372_s4 = inlined_call_operand.vmem [shape: f32[4,8], index: 4, kind: input, shape index: {}]   ;;  %s373_s5 = inlined_call_operand.hbm [shape: f32[4,8], index: 5, kind: input, shape index: {}]   ;;  %s374_s6 = inlined_call_operand.hbm [shape: f32[2,4], index: 6, kind: output, shape index: {}]  }
   0x1   :  { %12 = vsyncpa [#allocation10], 0 }
   0x2   :  { %13 = vsyncpa [#allocation8], 0  ;;  %s296_s21 = smov [#allocation6]   ;;  %s297_s23 = smov [#allocation9]  }
   0x3   :  { %s26_s22 = sshll.u32 %s296_s21, 4  ;;  %s38_s24 = sshll.u32 %s297_s23, 4  ;;  %s27_s22 = int_to_ptr.vmem [resolvable:$true] %s26_s22  ;;  %s39_s24 = int_to_ptr.vmem [resolvable:$true] %s38_s24 }
   0x4   :  { %s238_s25 = scalar_lea.vmem %s27_s22, 64  ;;  %p243_p1 = scmp.lt.s32.totalorder %s27_s22, %s27_s22 }
   0x5   :  { %p239_p0 = scmp.ne.s32.totalorder %s27_s22, %s238_s25  ;;  %p244_p2 = scmp.lt.s32.totalorder %s238_s25, %s238_s25 }
   0x7   :  { %p245_p3 = por %p244_p2, %p243_p1 }
   0x9   :  { %p246_p4 = pnand %p245_p3, %p239_p0 }
   0xb   :  { %249 = shalt.err (!%p246_p4)
}
   0xc   :  { %29 = dma.hbm_to_vmem [thread:$0]  %s371_s3, 64, %s27_s22, [#allocation7]  }
   0xd   :  { %s258_s28 = scalar_lea.vmem %s39_s24, 64  ;;  %p263_p6 = scmp.lt.s32.totalorder %s39_s24, %s39_s24 }
   0xe   :  { %p259_p5 = scmp.ne.s32.totalorder %s39_s24, %s258_s28  ;;  %p264_p7 = scmp.lt.s32.totalorder %s258_s28, %s258_s28 }
  0x10   :  { %p265_p8 = por %p264_p7, %p263_p6 }
  0x12   :  { %p266_p9 = pnand %p265_p8, %p259_p5 }
  0x14   :  { %269 = shalt.err (!%p266_p9)
}
  0x15   :  { %41 = dma.hbm_to_vmem [thread:$0]  %s373_s5, 64, %s39_s24, [#allocation10]  }
  0x16   :  { %290 = dma.done.wait [#allocation7], 64  }
  0x17   :  { %291 = vsyncadd [#allocation7], 4294967232 }
  0x18   :  { %292 = dma.done.wait [#allocation10], 64  }
  0x19   :  { %293 = vsyncadd [#allocation10], 4294967232  ;;  %v298_v0 = vmov 0   ;;  %v299_v1 = vmov 0.0   ;;  %v56_v2 = vld [vmem:[%s368_s0] sm:$0xf]  ;;  %v58_v3 = vlaneseq }
  0x1a   :  { %223 = vset.pattern.permute.xlu0 %v298_v0  ;;  %52 = vst [vmem:[#allocation2] sm:$0xf] %v299_v1  ;;  %53 = vst [vmem:[#allocation3] sm:$0xf] %v299_v1  ;;  %v66_v5 = vld [vmem:[%s370_s2] sm:$0xf]  ;;  %v90_v30 = vcvt.s32.f32 %v56_v2 }
  0x1b   :  { %54 = vst [vmem:[#allocation4] sm:$0xf] %v299_v1  ;;  %55 = vst [vmem:[#allocation5] sm:$0xf] %v299_v1  ;;  %63 = vperm.xlu0 %223, %v56_v2   ;;  %v59_v4 = vand.u32 127, %v58_v3  ;;  %vm70_vm0 = vcmask 60416  }
  0x1c   :  { %v72_v6 = vld [vmem:[#allocation6] sm:$0xf]  ;;  %v77_v7 = vld [vmem:[%s372_s4] sm:$0xf]  ;;  %v82_v8 = vld [vmem:[#allocation9] sm:$0xf]  ;;  %224 = vrcp.f32 %v90_v30 }
  0x1d   :  { %vm92_vm2 = vcmask 1043456   ;;  %s300_s0 = smov 1   ;;  %s301_s2 = smov 2   ;;  %v131_v38 = vld [vmem:[%s369_s1] sm:$0xf]  ;;  %vm134_vm3 = vcmask 27648  }
  0x1e   :  { %s302_s4 = smov 3   ;;  %v151_v39 = vsel %vm134_vm3, %v131_v38, 0.0  ;;  %vm125_vm4 = vcmask 7168   ;;  %vm127_vm5 = vcmask 15360   ;;  %vm129_vm6 = vcmask 23552   ;;  %s303_s1 = smov [#allocation11]  }
  0x1f   :  { %v152_v40 = vrot.slane %v151_v39, 4  ;;  %vm196_vm7 = vcmask 24576   ;;  %s205_s13 = sshll.u32 %s303_s1, 4  ;;  %s206_s13 = int_to_ptr.vmem [resolvable:$true] %s205_s13 }
  0x20   :  { %s270_s14 = scalar_lea.vmem %s206_s13, 32  ;;  %p275_p11 = scmp.lt.s32.totalorder %s206_s13, %s206_s13 }
  0x21   :  { %v67_v9 = vld [vmem:[#allocation2] sm:$0xf]  ;;  %v73_v11 = vld [vmem:[#allocation3] sm:$0xf]  ;;  %v153_v41 = vadd.f32 %v152_v40, %v151_v39  ;;  %p271_p10 = scmp.ne.s32.totalorder %s206_s13, %s270_s14  ;;  %p276_p12 = scmp.lt.s32.totalorder %s270_s14, %s270_s14 }
  0x22   :  { %v78_v12 = vld [vmem:[#allocation4] sm:$0xf]  ;;  %v83_v13 = vld [vmem:[#allocation5] sm:$0xf] }
  0x23   :  { %v154_v42 = vrot.slane %v153_v41, 2  ;;  %p277_p13 = por %p276_p12, %p275_p11 }
  0x25   :  { %v155_v43 = vadd.f32 %v154_v42, %v153_v41  ;;  %p278_p0 = pnand %p277_p13, %p271_p10 }
  0x27   :  { %v156_v44 = vrot.slane %v155_v43, 1 }
  0x29   :  { %v225_v31 = vpop.eup %224  ;;  %v157_v46 = vadd.f32 %v156_v44, %v155_v43 }
  0x2b   :  { %v158_v48 = vmul.f32 0.25, %v157_v46 }
  0x2d   :  { %v160_v52 = vsub.f32 %v131_v38, %v158_v48 }
  0x2f   :  { %v177_v58 = vmul.f32 %v160_v52, %v160_v52 }
  0x31   :  { %v178_v63 = vsel %vm134_vm3, %v177_v58, 0.0 }
  0x96   :  { %v64_v10 = vpop.permute.xlu0 %63 }
  0x97   :  { %vm65_vm1 = vcmp.lt.s32.totalorder %v59_v4, %v64_v10  ;;  %v179_v4 = vrot.slane %v178_v63, 4 }
  0x98   :  { %v68_v14 = vsel %vm65_vm1, %v66_v5, 0.0  ;;  %v74_v15 = vsel %vm65_vm1, %v72_v6, 0.0  ;;  %v79_v16 = vsel %vm65_vm1, %v77_v7, 0.0  ;;  %v84_v17 = vsel %vm65_vm1, %v82_v8, 0.0 }
  0x99   :  { %v69_v18 = vadd.f32 %v68_v14, %v67_v9  ;;  %v75_v19 = vadd.f32 %v74_v15, %v73_v11  ;;  %v80_v20 = vadd.f32 %v79_v16, %v78_v12  ;;  %v85_v21 = vadd.f32 %v84_v17, %v83_v13 }
  0x9a   :  { %v180_v9 = vadd.f32 %v179_v4, %v178_v63 }
  0x9b   :  { %71 = vst.msk [vmem:[#allocation2] sm:$0xf] %vm70_vm0, %v69_v18  ;;  %76 = vst.msk [vmem:[#allocation3] sm:$0xf] %vm70_vm0, %v75_v19 }
  0x9c   :  { %81 = vst.msk [vmem:[#allocation4] sm:$0xf] %vm70_vm0, %v80_v20  ;;  %86 = vst.msk [vmem:[#allocation5] sm:$0xf] %vm70_vm0, %v85_v21  ;;  %v181_v14 = vrot.slane %v180_v9, 2 }
  0x9e   :  { %v182_v18 = vadd.f32 %v181_v14, %v180_v9 }
  0xa0   :  { %v183_v21 = vrot.slane %v182_v18, 1 }
  0xa2   :  { %v98_v23 = vld [vmem:[#allocation3] sm:$0xf]  ;;  %v91_v28 = vld [vmem:[#allocation2] sm:$0xf] }
  0xa3   :  { %v103_v22 = vld [vmem:[#allocation4] sm:$0xf]  ;;  %v99_v25 = vsel %vm92_vm2, %v98_v23, 0.0  ;;  %v108_v26 = vld [vmem:[#allocation5] sm:$0xf]  ;;  %v93_v29 = vsel %vm92_vm2, %v91_v28, 0.0 }
  0xa4   :  { %v104_v24 = vsel %vm92_vm2, %v103_v22, 0.0  ;;  %100 = vadd.xlane.f32.xlu0 %v99_v25  ;;  %v109_v27 = vsel %vm92_vm2, %v108_v26, 0.0 }
  0xa5   :  { %105 = vadd.xlane.f32.xlu1 %v104_v24  ;;  %v184_v24 = vadd.f32 %v183_v21, %v182_v18 }
  0xa9   :  { %110 = vadd.xlane.f32.xlu1 %v109_v27 }
  0xad   :  { %94 = vadd.xlane.f32.xlu1 %v93_v29 }
 0x12d   :  { %v101_v33 = vpop.xlane.xlu0 %100 }
 0x12e   :  { %v106_v32 = vpop.xlane.xlu1 %105  ;;  %v102_v34 = vmul.f32 %v225_v31, %v101_v33 }
 0x12f   :  { %v107_v35 = vmul.f32 %v225_v31, %v106_v32 }
 0x130   :  { %114 = vrot.lane.b32.xlu1 %v102_v34, %s300_s0 }
 0x132   :  { %v111_v36 = vpop.xlane.xlu1 %110 }
 0x133   :  { %v112_v37 = vmul.f32 %v225_v31, %v111_v36 }
 0x134   :  { %118 = vrot.lane.b32.xlu1 %v107_v35, %s301_s2 }
 0x136   :  { %v95_v45 = vpop.xlane.xlu1 %94 }
 0x137   :  { %v97_v50 = vmul.f32 %v225_v31, %v95_v45 }
 0x138   :  { %122 = vrot.lane.b32.xlu1 %v112_v37, %s302_s4 }
 0x1a2   :  { %v115_v47 = vpop.permute.xlu1 %114 }
 0x1a3   :  { %v126_v51 = vsel %vm125_vm4, %v97_v50, %v115_v47 }
 0x1a6   :  { %v119_v49 = vpop.permute.xlu1 %118 }
 0x1a7   :  { %v128_v53 = vsel %vm127_vm5, %v126_v51, %v119_v49 }
 0x1aa   :  { %v123_v54 = vpop.permute.xlu1 %122 }
 0x1ab   :  { %v130_v55 = vsel %vm129_vm6, %v128_v53, %v123_v54 }
 0x1ac   :  { %v132_v56 = vsub.f32 %v130_v55, %v131_v38  ;;  %v143_v57 = vsel %vm134_vm3, %v130_v55, 0.0 }
 0x1ad   :  { %v144_v59 = vrot.slane %v143_v57, 4 }
 0x1ae   :  { %v133_v60 = vand.u32 2147483647, %v132_v56 }
 0x1af   :  { %v145_v61 = vadd.f32 %v144_v59, %v143_v57 }
 0x1b0   :  { %v135_v62 = vsel %vm134_vm3, %v133_v60, 0.0 }
 0x1b1   :  { %v136_v0 = vrot.slane %v135_v62, 4  ;;  %v146_v1 = vrot.slane %v145_v61, 2 }
 0x1b3   :  { %v137_v2 = vadd.f32 %v136_v0, %v135_v62  ;;  %v147_v3 = vadd.f32 %v146_v1, %v145_v61 }
 0x1b5   :  { %v138_v5 = vrot.slane %v137_v2, 2  ;;  %v148_v6 = vrot.slane %v147_v3, 1 }
 0x1b7   :  { %v139_v7 = vadd.f32 %v138_v5, %v137_v2  ;;  %v149_v8 = vadd.f32 %v148_v6, %v147_v3 }
 0x1b9   :  { %v150_v10 = vmul.f32 0.25, %v149_v8  ;;  %v140_v11 = vrot.slane %v139_v7, 1 }
 0x1bb   :  { %v159_v12 = vsub.f32 %v130_v55, %v150_v10  ;;  %v141_v13 = vadd.f32 %v140_v11, %v139_v7 }
 0x1bd   :  { %v169_v15 = vmul.f32 %v159_v12, %v159_v12  ;;  %v142_v16 = vmul.f32 0.25, %v141_v13  ;;  %v161_v28 = vmul.f32 %v160_v52, %v159_v12 }
 0x1bf   :  { %v170_v17 = vsel %vm134_vm3, %v169_v15, 0.0  ;;  %197 = vst.msk [vmem:[#allocation11] sm:$0x1] %vm196_vm7, %v142_v16  ;;  %v162_v29 = vsel %vm134_vm3, %v161_v28, 0.0 }
 0x1c0   :  { %v171_v19 = vrot.slane %v170_v17, 4  ;;  %v163_v30 = vrot.slane %v162_v29, 4 }
 0x1c2   :  { %v172_v20 = vadd.f32 %v171_v19, %v170_v17  ;;  %v164_v31 = vadd.f32 %v163_v30, %v162_v29 }
 0x1c4   :  { %v173_v22 = vrot.slane %v172_v20, 2  ;;  %v165_v33 = vrot.slane %v164_v31, 2 }
 0x1c6   :  { %v174_v23 = vadd.f32 %v173_v22, %v172_v20  ;;  %v166_v38 = vadd.f32 %v165_v33, %v164_v31 }
 0x1c8   :  { %v175_v25 = vrot.slane %v174_v23, 1  ;;  %v167_v39 = vrot.slane %v166_v38, 1 }
 0x1ca   :  { %v176_v26 = vadd.f32 %v175_v25, %v174_v23  ;;  %v168_v40 = vadd.f32 %v167_v39, %v166_v38 }
 0x1cc   :  { %v186_v27 = vmul.f32 %v184_v24, %v176_v26  ;;  %v185_v41 = vand.u32 2147483647, %v168_v40 }
 0x1ce   :  { %226 = vrsqrt.f32 %v186_v27  ;;  %vm189_vm8 = vcmp.eq.f32.partialorder %v186_v27, inf  ;;  %v192_v35 = vand.u32 2147483648, %v186_v27  ;;  %vm191_vm9 = vcmp.eq.f32.partialorder %v186_v27, 0.0 }
 0x1db   :  { %v227_v32 = vpop.eup %226 }
 0x1dc   :  { %v188_v34 = vmul.f32 %v227_v32, %v186_v27 }
 0x1de   :  { %v190_v36 = vsel %vm189_vm8, %v186_v27, %v188_v34 }
 0x1df   :  { %v193_v37 = vsel %vm191_vm9, %v192_v35, %v190_v36 }
 0x1e0   :  { %228 = vrcp.f32 %v193_v37 }
 0x1ed   :  { %v229_v42 = vpop.eup %228 }
 0x1ee   :  { %v195_v43 = vmul.f32 %v229_v42, %v185_v41 }
 0x1f0   :  { %198 = vst.msk [vmem:[#allocation11 + $0x1] sm:$0x1] %vm196_vm7, %v195_v43 }
 0x1f1   :  { %281 = shalt.err (!%p278_p0)
}
 0x1f2   :  { %208 = dma.vmem_to_hbm [thread:$0]  %s206_s13, 32, %s374_s6, [#allocation8]  }
 0x1f3   :  { %294 = dma.done.wait [#allocation8], 32  }
 0x1f4   :  { %295 = vsyncadd [#allocation8], 4294967264 }
 0x1f5   :  { %212 = vsyncpa [#allocation7], 1 }
 0x1f6   :  { %213 = vsyncpa [#allocation10], 1 }
 0x1f7   :  { %214 = vsyncpa [#allocation8], 1 }

</bundles_post_ra>
